<compile_context>
chip_gen: v7x
topology: tpu7x:2x2x1
jax: 0.10.0
libtpu: 0.0.40
codegen_flags: <defaults>
</compile_context>

<pallas_src>
import functools
import math

import jax
import jax.numpy as jnp
from jax.experimental import pallas as pl
from jax.experimental.pallas import tpu as pltpu


def _inv_freq(embedding_dim: int) -> jnp.ndarray:
    """Same inverse-frequency vector the PyTorch table builder uses."""
    half = embedding_dim // 2
    scale = math.log(10000.0) / (half - 1)
    return jnp.exp(jnp.arange(half, dtype=jnp.float32) * -scale)  # [half]


def get_sinusoidal_embedding(num_embeddings: int, embedding_dim: int, padding_idx: int):
    """Mirrors SinusoidalPositionalEmbedding.get_embedding (reference table)."""
    inv_freq = _inv_freq(embedding_dim)
    pos = jnp.arange(num_embeddings, dtype=jnp.float32)[:, None] * inv_freq[None, :]
    emb = jnp.concatenate([jnp.sin(pos), jnp.cos(pos)], axis=1)
    if embedding_dim % 2 == 1:
        emb = jnp.concatenate([emb, jnp.zeros((num_embeddings, 1), jnp.float32)], axis=1)
    if padding_idx is not None:
        emb = emb.at[padding_idx, :].set(0.0)
    return emb


# ----------------------------------------------------------------------------- kernels
def _dense_kernel(pos_ref, rep_ref, freq_ref, phase_ref, out_ref, *, padding_idx: int):
    # pos_ref:   [tr, G]   f32 positions (G sequence slots folded per row)
    # rep_ref:   [G, W]    f32 0/1 repeat matrix (resident), W = G*D
    # freq_ref:  [1, W]    f32 (resident), phase_ref: [1, W] f32 (resident)
    # out_ref:   [tr, W]   f32 (lane-dense: W is a multiple of 128)
    pos = pos_ref[...]
    # Exact repeat of each position across its D lanes (0/1 matrix, f32 accum).
    p = jnp.dot(pos, rep_ref[...],
                precision=jax.lax.Precision.HIGHEST,
                preferred_element_type=jnp.float32)            # [tr, W]
    ang = p * freq_ref[...] + phase_ref[...]                   # one FMA
    # cos(x) == sin(x + pi/2); padding positions (== padding_idx) map to the
    # zeroed table row.
    out_ref[...] = jnp.where(p == float(padding_idx), 0.0, jnp.sin(ang))


def _plain_kernel(pos_ref, freq_ref, phase_ref, out_ref, *, padding_idx: int):
    # pos_ref: [tr, 1] f32;  freq/phase: [1, W];  out_ref: [tr, W] with W = D.
    p = pos_ref[...]                                           # [tr, 1]
    ang = p * freq_ref[...] + phase_ref[...]                   # broadcast -> [tr, W]
    out_ref[...] = jnp.where(p == float(padding_idx), 0.0, jnp.sin(ang))


# ----------------------------------------------------------------------------- wrapper
def _lane_group(embedding_dim: int, seq_len: int) -> int:
    """How many sequence positions to fold per vreg row for lane density."""
    if embedding_dim % 128 == 0:
        return 1                                   # already lane-dense
    g = math.lcm(embedding_dim, 128) // embedding_dim
    if g <= 64 and seq_len % g == 0:
        return g
    return 1                                       # fall back to full-dim last axis


def _pick_row_tile(n_rows: int, row_bytes: int, budget_bytes: int) -> int:
    """Largest power-of-two multiple of 8 rows whose working set fits the budget."""
    tr = 8
    while tr * 2 * row_bytes * 6 <= budget_bytes and tr < 1024:
        tr *= 2
    # Prefer >=2 grid steps (v7x megacore) when there are enough rows.
    while tr > 8 and pl.cdiv(n_rows, tr) < 2:
        tr //= 2
    return tr


def sinusoidal_positional_embedding(tokens, padding_idx: int, embedding_dim: int):
    """tokens: [B, S] int token ids -> [B, S, embedding_dim] f32 embeddings."""
    B, S = tokens.shape
    D = embedding_dim
    half = D // 2
    tokens = tokens.astype(jnp.int32)

    # make_positions, hoisted to XLA: O(B*S) vs. the O(B*S*D) output writeback.
    mask = (tokens != padding_idx).astype(jnp.int32)
    positions = (jnp.cumsum(mask, axis=1) * mask + padding_idx).astype(jnp.float32)

    # Lane-dense layout: fold G sequence positions per row so the last dim is a
    # multiple of 128 (unmasked vector stores, full vreg utilization).
    G = _lane_group(D, S)
    W = G * D
    n_rows = (B * S) // G
    pos2d = positions.reshape(n_rows, G)

    # D-aware tiling with explicit VMEM budget (safe under v7x's 64 MiB VMEM).
    tr = _pick_row_tile(n_rows, W * 4, 24 * 1024 * 1024)
    n_pad = pl.cdiv(n_rows, tr) * tr
    if n_pad != n_rows:
        # Padded rows carry position == padding_idx -> masked to zero in-kernel.
        pos2d = jnp.pad(pos2d, ((0, n_pad - n_rows), (0, 0)),
                        constant_values=float(padding_idx))

    # Resident frequency / phase vectors (cos(x) = sin(x + pi/2); odd trailing
    # lane has freq = phase = 0 -> sin(0) = 0, matching the zeroed last column).
    inv = _inv_freq(D)
    freq_d = jnp.zeros((D,), jnp.float32).at[:half].set(inv).at[half:2 * half].set(inv)
    phase_d = jnp.zeros((D,), jnp.float32).at[half:2 * half].set(jnp.float32(math.pi / 2.0))
    freq_dense = jnp.tile(freq_d, G)[None, :]     # [1, W]
    phase_dense = jnp.tile(phase_d, G)[None, :]   # [1, W]

    if G > 1:
        # 0/1 repeat matrix: rep[g, g*D + d] = 1.
        rep = (jnp.arange(W, dtype=jnp.int32)[None, :] // D
               == jnp.arange(G, dtype=jnp.int32)[:, None]).astype(jnp.float32)
        kernel = functools.partial(_dense_kernel, padding_idx=padding_idx)
        inputs = (pos2d, rep, freq_dense, phase_dense)
        in_specs = [
            pl.BlockSpec((tr, G), lambda i: (i, 0)),   # positions tile
            pl.BlockSpec((G, W), lambda i: (0, 0)),    # repeat matrix, resident
            pl.BlockSpec((1, W), lambda i: (0, 0)),    # freqs, resident
            pl.BlockSpec((1, W), lambda i: (0, 0)),    # phases, resident
        ]
    else:
        kernel = functools.partial(_plain_kernel, padding_idx=padding_idx)
        inputs = (pos2d, freq_dense, phase_dense)
        in_specs = [
            pl.BlockSpec((tr, 1), lambda i: (i, 0)),   # positions tile
            pl.BlockSpec((1, W), lambda i: (0, 0)),    # freqs, resident
            pl.BlockSpec((1, W), lambda i: (0, 0)),    # phases, resident
        ]

    out2d = pl.pallas_call(
        kernel,
        out_shape=jax.ShapeDtypeStruct((n_pad, W), jnp.float32),
        grid_spec=pltpu.PrefetchScalarGridSpec(
            num_scalar_prefetch=0,
            grid=(n_pad // tr,),
            in_specs=in_specs,
            out_specs=pl.BlockSpec((tr, W), lambda i: (i, 0)),
        ),
        compiler_params=pltpu.CompilerParams(
            # No carry anymore: the single (row-tile) axis is fully parallel.
            dimension_semantics=("parallel",),
            vmem_limit_bytes=48 * 1024 * 1024,
        ),
    )(*inputs)

    # Row-major reshape back: rows are (b, s-group) and lanes are (g, d).
    return out2d[:n_rows].reshape(B, S, D)


def _reference(tokens, weights, padding_idx):
    mask = (tokens != padding_idx).astype(jnp.int32)
    positions = jnp.cumsum(mask, axis=1) * mask + padding_idx
    return jnp.take(weights, positions.reshape(-1), axis=0).reshape(
        tokens.shape[0], tokens.shape[1], weights.shape[1]
    )


# TODO(synk): the incremental_state / timestep single-step decode branch of the
# module is not implemented (only the standard [B, S] forward path).

if __name__ == "__main__":
    embedding_dim = 32
    padding_idx = 1
    init_size = 64          # reference table rows (module default 1024; small here)

    B, S = 2, 8

    # Reference sinusoidal table, shape [init_size, embedding_dim].
    weights = get_sinusoidal_embedding(init_size, embedding_dim, padding_idx)

    # Deterministic example token ids with a few padding symbols.
    key = jax.random.PRNGKey(0)
    tokens = jax.random.randint(key, (B, S), 0, 20, dtype=jnp.int32)
    tokens = tokens.at[1, S - 2:].set(padding_idx)
    tokens = tokens.at[0, 0].set(padding_idx)

    out = sinusoidal_positional_embedding(tokens, padding_idx, embedding_dim)
    out = jax.block_until_ready(out)

    ref = _reference(tokens, weights, padding_idx)
    assert out.shape == (B, S, embedding_dim)
    assert out.dtype == jnp.float32
    assert jnp.allclose(out, ref, atol=1e-4, rtol=1e-4), float(jnp.max(jnp.abs(out - ref)))

    print("KERNEL_OK")
</pallas_src>

<mosaic_0001>
module attributes {stable_mosaic.version = 11 : i64} {
  func.func @_dense_kernel(%arg0: i32, %arg1: memref<8x4xf32, #tpu.memory_space<vmem>>, %arg2: memref<4x128xf32, #tpu.memory_space<vmem>>, %arg3: memref<1x128xf32, #tpu.memory_space<vmem>>, %arg4: memref<1x128xf32, #tpu.memory_space<vmem>>, %arg5: memref<8x128xf32, #tpu.memory_space<vmem>>) attributes {dimension_semantics = [#tpu.dimension_semantics<parallel>], iteration_bounds = array<i64: 1>, scalar_prefetch = 0 : i64, scratch_operands = 0 : i64, tpu.core_type = #tpu.core_type<tc>, window_params = [{transform_indices = @transform_0, window_bounds = array<i64: 8, 4>}, {pipeline_mode = #tpu.pipeline_mode<synchronous>, transform_indices = @transform_1, window_bounds = array<i64: 4, 128>}, {pipeline_mode = #tpu.pipeline_mode<synchronous>, transform_indices = @transform_2, window_bounds = array<i64: 1, 128>}, {pipeline_mode = #tpu.pipeline_mode<synchronous>, transform_indices = @transform_3, window_bounds = array<i64: 1, 128>}, {transform_indices = @transform_4, window_bounds = array<i64: 8, 128>}]} {
    %c0 = arith.constant 0 : index
    %c0_0 = arith.constant 0 : index
    %0 = vector.load %arg1[%c0, %c0_0] : memref<8x4xf32, #tpu.memory_space<vmem>>, vector<8x4xf32>
    %c0_1 = arith.constant 0 : index
    %c0_2 = arith.constant 0 : index
    %1 = vector.load %arg2[%c0_1, %c0_2] : memref<4x128xf32, #tpu.memory_space<vmem>>, vector<4x128xf32>
    %cst = arith.constant dense<0.000000e+00> : vector<8x128xf32>
    %2 = tpu.matmul %0, %1, %cst {dimension_numbers = #tpu.dot_dimension_numbers<[1], [0], [0], [1], [0, 0, 1, 1], [], []>, precision = #tpu.contract_precision<fp32>} : vector<8x4xf32>, vector<4x128xf32>, vector<8x128xf32> -> vector<8x128xf32>
    %c0_3 = arith.constant 0 : index
    %c0_4 = arith.constant 0 : index
    %3 = vector.load %arg3[%c0_3, %c0_4] : memref<1x128xf32, #tpu.memory_space<vmem>>, vector<1x128xf32>
    %4 = vector.broadcast %3 : vector<1x128xf32> to vector<8x128xf32>
    %5 = arith.mulf %2, %4 : vector<8x128xf32>
    %c0_5 = arith.constant 0 : index
    %c0_6 = arith.constant 0 : index
    %6 = vector.load %arg4[%c0_5, %c0_6] : memref<1x128xf32, #tpu.memory_space<vmem>>, vector<1x128xf32>
    %7 = vector.broadcast %6 : vector<1x128xf32> to vector<8x128xf32>
    %8 = arith.addf %5, %7 : vector<8x128xf32>
    %cst_7 = arith.constant 1.000000e+00 : f32
    %9 = vector.broadcast %cst_7 : f32 to vector<8x128xf32>
    %10 = arith.cmpf oeq, %2, %9 : vector<8x128xf32>
    %11 = math.sin %8 : vector<8x128xf32>
    %cst_8 = arith.constant 0.000000e+00 : f32
    %12 = vector.broadcast %cst_8 : f32 to vector<8x128xf32>
    %13 = arith.select %10, %12, %11 : vector<8x128xi1>, vector<8x128xf32>
    %c0_9 = arith.constant 0 : index
    %c0_10 = arith.constant 0 : index
    %14 = vector.load %arg5[%c0_9, %c0_10] : memref<8x128xf32, #tpu.memory_space<vmem>>, vector<8x128xf32>
    tpu.vector_store %arg5[%c0_9, %c0_10], %13 {strides = array<i32>} : memref<8x128xf32, #tpu.memory_space<vmem>>, vector<8x128xf32>,
    return
  }
  func.func @transform_0(%arg0: i32) -> (i32, i32) {
    %c0_i32 = arith.constant 0 : i32
    %c0_i32_0 = arith.constant 0 : i32
    return %arg0, %c0_i32 : i32, i32
  }
  func.func @transform_1(%arg0: i32) -> (i32, i32) {
    %c0_i32 = arith.constant 0 : i32
    %c0_i32_0 = arith.constant 0 : i32
    %c0_i32_1 = arith.constant 0 : i32
    return %c0_i32, %c0_i32_0 : i32, i32
  }
  func.func @transform_2(%arg0: i32) -> (i32, i32) {
    %c0_i32 = arith.constant 0 : i32
    %c0_i32_0 = arith.constant 0 : i32
    %c0_i32_1 = arith.constant 0 : i32
    return %c0_i32, %c0_i32_0 : i32, i32
  }
  func.func @transform_3(%arg0: i32) -> (i32, i32) {
    %c0_i32 = arith.constant 0 : i32
    %c0_i32_0 = arith.constant 0 : i32
    %c0_i32_1 = arith.constant 0 : i32
    return %c0_i32, %c0_i32_0 : i32, i32
  }
  func.func @transform_4(%arg0: i32) -> (i32, i32) {
    %c0_i32 = arith.constant 0 : i32
    %c0_i32_0 = arith.constant 0 : i32
    return %arg0, %c0_i32 : i32, i32
  }
}

</mosaic_0001>

<bundles_post_ra>
// kernel: tpu_custom_call.1
= control target key start
LH: loop header
LB: loop body
LE: loop exit
PB: predicated region body
PF: predicated region fallthrough
CT: control target
= control target key end

     0   :  { %vm24_vm0 = vcmask 1043456   ;;  %v709_v2 = vmov 0.0   ;;  %vm710_vm1 = vmmov 0   ;;  %vm20_vm2 = vcmask 31744   ;;  %s798_s0 = inlined_call_operand.vmem [shape: f32[8,4], index: 0, kind: input, shape index: {}]   ;;  %s799_s1 = inlined_call_operand.vmem [shape: f32[4,128], index: 1, kind: input, shape index: {}]   ;;  %s800_s2 = inlined_call_operand.vmem [shape: f32[1,128], index: 2, kind: input, shape index: {}]   ;;  %s801_s3 = inlined_call_operand.vmem [shape: f32[1,128], index: 3, kind: input, shape index: {}]   ;;  %s802_s4 = inlined_call_operand.hbm [shape: f32[8,128], index: 4, kind: output, shape index: {}]  }
   0x1   :  { %v19_v0 = vld [vmem:[%s799_s1] sm:$0xf]  ;;  %644 = vmatprep.subr.mxu0 %v709_v2  ;;  %646 = vmatprep.mubr.msk.f32.mxu0 %vm710_vm1, %v709_v2 }
   0x2   :  { %v18_v1 = vld [vmem:[%s798_s0] sm:$0xff]  ;;  %v26_v3 = vsel %vm24_vm0, %v19_v0, 0 }
   0x3   :  { %9 = vsyncpa [#allocation3], 0  ;;  %v29_v4 = vand.u32 4294901760, %v26_v3  ;;  %v22_v5 = vsel %vm20_vm2, %v18_v1, 0  ;;  %629 = vmatprep.subr.mxu1 %v709_v2  ;;  %631 = vmatprep.mubr.msk.f32.mxu1 %vm710_vm1, %v709_v2  ;;  %v611_v18 = vld [vmem:[%s800_s2] ss:$0 sm:$0xff] }
   0x4   :  { %v94_v6 = vand.u32 4294901760, %v22_v5  ;;  %v612_v21 = vld [vmem:[%s801_s3] ss:$0 sm:$0xff]  ;;  %v711_v34 = vmov 683565275   ;;  %s717_s2 = smov [#allocation2]  }
   0x5   :  { %v106_v7 = vsub.f32 %v26_v3, %v29_v4  ;;  %645 = vmatpush3.msra.mxu0 %v29_v4  ;;  %630 = vmatpush3.msra.mxu1 %v29_v4  ;;  %v712_v36 = vmov 2475754826   ;;  %v713_v39 = vmov 2131351028   ;;  %v714_v42 = vmov 2102212464  }
   0x6   :  { %v95_v8 = vsub.f32 %v22_v5, %v94_v6  ;;  %634 = vmatprep.subr.mxu1 %v709_v2  ;;  %649 = vmatprep.subr.mxu0 %v709_v2  ;;  %v715_v45 = vmov 920167782   ;;  %v716_v48 = vmov 1326507024   ;;  %s603_s3 = sshll.u32 %s717_s2, 4  ;;  %s604_s3 = int_to_ptr.vmem [resolvable:$true] %s603_s3 }
   0x7   :  { %v107_v9 = vand.u32 4294901760, %v106_v7  ;;  %s685_s21 = scalar_lea.vmem %s604_s3, 128  ;;  %p690_p1 = scmp.lt.s32.totalorder %s604_s3, %s604_s3 }
   0x8   :  { %v96_v10 = vand.u32 4294901760, %v95_v8  ;;  %p686_p0 = scmp.ne.s32.totalorder %s604_s3, %s685_s21  ;;  %p691_p2 = scmp.lt.s32.totalorder %s685_s21, %s685_s21 }
   0x9   :  { %v108_v11 = vsub.f32 %v106_v7, %v107_v9 }
   0xa   :  { %647 = vmatmul.mubr.f32.vlgmr.msra.gmra.mrb[0].mxu0 %v96_v10  ;;  %v97_v12 = vsub.f32 %v95_v8, %v96_v10  ;;  %p692_p3 = por %p691_p2, %p690_p1 }
   0xb   :  { %v109_v13 = vand.u32 4294901760, %v108_v11  ;;  %650 = vmatpush3.msra.mxu0 %v107_v9  ;;  %651 = vmatprep.mubr.msk.f32.mxu0 %vm710_vm1, %v709_v2 }
   0xc   :  { %v98_v14 = vand.u32 4294901760, %v97_v12  ;;  %654 = vmatprep.subr.mxu0 %v709_v2  ;;  %p693_p4 = pnand %p692_p3, %p686_p0 }
   0xe   :  { %632 = vmatmul.mubr.f32.vlgmr.msra.gmra.mrb[0].mxu1 %v98_v14 }
   0xf   :  { %635 = vmatpush3.msra.mxu1 %v109_v13  ;;  %636 = vmatprep.mubr.msk.f32.mxu1 %vm710_vm1, %v709_v2 }
  0x10   :  { %639 = vmatprep.subr.mxu1 %v709_v2 }
  0x12   :  { %652 = vmatmul.mubr.f32.vlgmr.msra.gmra.mrb[0].mxu0 %v94_v6 }
  0x13   :  { %655 = vmatpush3.msra.mxu0 %v29_v4  ;;  %656 = vmatprep.mubr.msk.f32.mxu0 %vm710_vm1, %v709_v2 }
  0x16   :  { %637 = vmatmul.mubr.f32.vlgmr.msra.gmra.mrb[0].mxu1 %v94_v6 }
  0x17   :  { %640 = vmatpush3.msra.mxu1 %v106_v7  ;;  %641 = vmatprep.mubr.msk.f32.mxu1 %vm710_vm1, %v709_v2 }
  0x1a   :  { %657 = vmatmul.mubr.f32.vlgmr.msra.gmra.mrb[0].mxu0 %v94_v6 }
  0x1e   :  { %642 = vmatmul.mubr.f32.vlgmr.msra.gmra.mrb[0].mxu1 %v95_v8 }
  0xed   :  { %v470_v15 = vpop.f32.mrb[0].mxu0 }
  0xee   :  { %v658_v16 = vpop.f32.mrb[1].mxu0 }
  0xf1   :  { %v250_v17 = vpop.f32.mrb[0].mxu1 }
  0xf2   :  { %v758_v19 = vadd.f32 %v470_v15, %v250_v17  ;;  %v643_v20 = vpop.f32.mrb[1].mxu1 }
  0xf4   :  { %v481_v22 = vmul.f32 %v758_v19, %v611_v18  ;;  %vm490_vm0 = vcmp.eq.f32.partialorder %v758_v19, 1.0 }
  0xf6   :  { %v764_v23 = vadd.f32 %v612_v21, %v481_v22 }
  0xf8   :  { %v494_v24 = vand.u32 2139095040, %v764_v23  ;;  %v491_v28 = vand.u32 2147483647, %v764_v23  ;;  %vm493_vm10 = vcmp.lt.s32.totalorder %v764_v23, 0  ;;  %vm583_vm15 = vweird.f32 %v764_v23 }
  0xfa   :  { %v495_v25 = vshrl.u32 %v494_v24, 23  ;;  %v498_v32 = vand.u32 8388607, %v491_v28  ;;  %vm492_vm11 = vcmp.le.f32.partialorder %v491_v28, 0.7853982 }
  0xfc   :  { %v613_v26 = vadd.s32 4294967169, %v495_v25  ;;  %v499_v50 = vor.u32 8388608, %v498_v32 }
  0xfe   :  { %v501_v27 = vadd.s32 1, %v613_v26  ;;  %v539_v0 = vshll.u32 %v499_v50, 8 }
 0x100   :  { %vm502_vm3 = vcmp.gt.s32.totalorder %v501_v27, 0 }
 0x101   :  { %v503_v29 = vsel %vm502_vm3, %v501_v27, 0 }
 0x102   :  { %v505_v30 = vand.u32 31, %v503_v29  ;;  %v504_v33 = vshrl.u32 %v503_v29, 5 }
 0x104   :  { %v506_v31 = vsub.s32 32, %v505_v30  ;;  %v508_v35 = vshll.u32 %v711_v34, %v505_v30  ;;  %v511_v37 = vshll.u32 %v712_v36, %v505_v30  ;;  %v514_v41 = vshll.u32 %v713_v39, %v505_v30 }
 0x105   :  { %v517_v44 = vshll.u32 %v714_v42, %v505_v30  ;;  %v520_v47 = vshll.u32 %v715_v45, %v505_v30  ;;  %vm523_vm4 = vcmp.lt.s32.totalorder %v504_v33, 1  ;;  %vm526_vm5 = vcmp.lt.s32.totalorder %v504_v33, 4 }
 0x106   :  { %v509_v38 = vshrl.u32 %v712_v36, %v506_v31  ;;  %v512_v40 = vshrl.u32 %v713_v39, %v506_v31  ;;  %v515_v43 = vshrl.u32 %v714_v42, %v506_v31  ;;  %v518_v46 = vshrl.u32 %v715_v45, %v506_v31 }
 0x107   :  { %v521_v49 = vshrl.u32 %v716_v48, %v506_v31  ;;  %v507_v59 = vshrl.u32 %v711_v34, %v506_v31  ;;  %vm525_vm6 = vcmp.lt.s32.totalorder %v504_v33, 3  ;;  %vm524_vm7 = vcmp.lt.s32.totalorder %v504_v33, 2 }
 0x108   :  { %v510_v51 = vor.u32 %v509_v38, %v508_v35  ;;  %v513_v52 = vor.u32 %v512_v40, %v511_v37  ;;  %v516_v53 = vor.u32 %v515_v43, %v514_v41  ;;  %v519_v54 = vor.u32 %v518_v46, %v517_v44 }
 0x109   :  { %v522_v55 = vor.u32 %v521_v49, %v520_v47 }
 0x10a   :  { %v528_v56 = vsel %vm526_vm5, %v516_v53, 2102212464  ;;  %v531_v57 = vsel %vm523_vm4, %v510_v51, %v513_v52  ;;  %v535_v58 = vsel %vm523_vm4, %v513_v52, %v516_v53  ;;  %v532_v60 = vsel %vm526_vm5, %v519_v54, 920167782 }
 0x10b   :  { %v536_v61 = vsel %vm526_vm5, %v522_v55, 1326507024  ;;  %v533_v62 = vsel %vm525_vm6, %v516_v53, %v532_v60  ;;  %v527_v1 = vsel %vm523_vm4, %v507_v59, %v510_v51  ;;  %v529_v2 = vsel %vm525_vm6, %v513_v52, %v528_v56 }
 0x10c   :  { %v537_v63 = vsel %vm525_vm6, %v519_v54, %v536_v61  ;;  %v534_v3 = vsel %vm524_vm7, %v531_v57, %v533_v62  ;;  %v530_v9 = vsel %vm524_vm7, %v527_v1, %v529_v2 }
 0x10d   :  { %v538_v4 = vsel %vm524_vm7, %v535_v58, %v537_v63  ;;  %v773_v7 = vmul.u32.u64.low %v539_v0, %v534_v3  ;;  %v774_v8 = vmul.u32.u64.high %v539_v0, %v534_v3, %v773_v7  ;;  %v546_v11 = vmul.u32 %v539_v0, %v530_v9 }
 0x10e   :  { %v770_v5 = vmul.u32.u64.low %v539_v0, %v538_v4  ;;  %v771_v6 = vmul.u32.u64.high %v539_v0, %v538_v4, %v770_v5 }
 0x10f   :  { %v549_v10 = vadd.s32 1, %v774_v8 }
 0x110   :  { %vm548_vm8 = vc.u32 %v771_v6, %v773_v7  ;;  %v547_v25 = vadd.s32 %v773_v7, %v771_v6 }
 0x111   :  { %v550_v12 = vsel %vm548_vm8, %v549_v10, %v774_v8 }
 0x112   :  { %v551_v13 = vadd.s32 %v550_v12, %v546_v11 }
 0x114   :  { %v552_v14 = vadd.s32 536870912, %v551_v13 }
 0x116   :  { %v553_v15 = vshrl.u32 %v552_v14, 30 }
 0x118   :  { %v554_v16 = vshll.u32 %v553_v15, 30  ;;  %v577_v38 = vsub.s32 4, %v553_v15 }
 0x11a   :  { %v555_v17 = vsub.s32 %v551_v13, %v554_v16  ;;  %v578_v41 = vsel %vm493_vm10, %v577_v38, %v553_v15 }
 0x11b   :  { %v580_v43 = vsel %vm492_vm11, 0, %v578_v41 }
 0x11c   :  { %v557_v18 = vsub.s32 0, %v555_v17  ;;  %v584_v44 = vadd.s32 3, %v580_v43 }
 0x11e   :  { %v614_v20 = vmin.u32 %v557_v18, %v555_v17  ;;  %v585_v45 = vand.u32 3, %v584_v44 }
 0x120   :  { %v559_v21 = vclz %v614_v20  ;;  %vm590_vm12 = vcmp.eq.s32.totalorder %v585_v45, 2  ;;  %vm587_vm13 = vcmp.eq.s32.totalorder %v585_v45, 0  ;;  %vm586_vm14 = vcmp.lt.s32.totalorder %v585_v45, 2 }
 0x122   :  { %v615_v22 = vadd.s32 4294967294, %v559_v21 }
 0x124   :  { %vm616_vm9 = vcmp.lt.s32.totalorder %v615_v22, 0 }
 0x125   :  { %v562_v24 = vsel %vm616_vm9, 0, %v615_v22 }
 0x126   :  { %v563_v26 = vsub.s32 32, %v562_v24  ;;  %v567_v27 = vsub.s32 4294967266, %v562_v24  ;;  %v564_v29 = vshll.u32 %v555_v17, %v562_v24 }
 0x128   :  { %v565_v30 = vshrl.u32 %v547_v25, %v563_v26  ;;  %v568_v31 = vadd.s32 127, %v567_v27 }
 0x12a   :  { %v566_v32 = vor.u32 %v565_v30, %v564_v29  ;;  %v569_v33 = vshll.u32 %v568_v31, 23 }
 0x12c   :  { %v570_v34 = vor.u32 4788187, %v569_v33  ;;  %v573_v36 = vcvt.s32.f32 %v566_v32 }
 0x12e   :  { %v571_v35 = vand.u32 2147483647, %v570_v34 }
 0x130   :  { %v574_v37 = vmul.f32 %v573_v36, %v571_v35 }
 0x132   :  { %v575_v39 = vxor.u32 2147483648, %v574_v37 }
 0x134   :  { %v576_v40 = vsel %vm493_vm10, %v575_v39, %v574_v37 }
 0x135   :  { %v579_v42 = vsel %vm492_vm11, %v764_v23, %v576_v40 }
 0x136   :  { %681 = vcosq.f32 %v579_v42 }
 0x137   :  { %683 = vsinq.f32 %v579_v42 }
 0x140   :  { %v682_v46 = vpop.eup %681 }
 0x141   :  { %v684_v47 = vpop.eup %683  ;;  %v591_v48 = vxor.u32 2147483648, %v682_v46 }
 0x142   :  { %v588_v49 = vxor.u32 2147483648, %v684_v47 }
 0x143   :  { %v592_v50 = vsel %vm590_vm12, %v591_v48, %v684_v47 }
 0x144   :  { %v589_v28 = vsel %vm587_vm13, %v682_v46, %v588_v49 }
 0x145   :  { %v593_v51 = vsel %vm586_vm14, %v589_v28, %v592_v50 }
 0x146   :  { %v594_v52 = vsel %vm583_vm15, nan, %v593_v51 }
 0x147   :  { %v595_v53 = vsel %vm490_vm0, 0.0, %v594_v52 }
 0x148   :  { %596 = vst [vmem:[#allocation2] sm:$0xff] %v595_v53 }
 0x149   :  { %696 = shalt.err (!%p693_p4)
}
 0x14a   :  { %s697_s24 = scalar_lea.hbm %s802_s4, 128 }
 0x14b   :  { %p698_p5 = scmp.ne.s32.totalorder %s802_s4, %s697_s24  ;;  %p701_p6 = scmp.lt.u32.totalorder %s697_s24, %s802_s4 }
 0x14d   :  { %p703_p7 = pnand %p701_p6, %p698_p5 }
 0x14f   :  { %706 = shalt.err (!%p703_p7)
}
 0x150   :  { %606 = dma.vmem_to_hbm [thread:$0]  %s604_s3, 128, %s802_s4, [#allocation3]  }
 0x151   :  { %707 = dma.done.wait [#allocation3], 128  }
 0x152   :  { %708 = vsyncadd [#allocation3], 4294967168 }
 0x153   :  { %610 = vsyncpa [#allocation3], 1 }

</bundles_post_ra>
